<compile_context>
chip_gen: v7x
topology: tpu7x:2x2x1
jax: 0.10.0
libtpu: 0.0.40
codegen_flags: <defaults>
</compile_context>

<pallas_src>
import functools

import jax
import jax.numpy as jnp
from jax.experimental import pallas as pl
from jax.experimental.pallas import tpu as pltpu


def _highway_kernel(feat_ref, interesting_ref, w_ref, b_ref, out_ref, *,
                    matmul_dtype):
    # MXU: (TM, D) @ (D, D), low-precision operands, f32 accumulate.  The cast
    # of `interesting` happens here (rides free VPU slack under the DMA)
    # instead of as a separate un-fused XLA pass in the wrapper.
    x = interesting_ref[...].astype(matmul_dtype)        # (TM, D)
    w = w_ref[...]                                       # (D, D), matmul dtype
    y = jnp.dot(x, w, preferred_element_type=jnp.float32)
    y = y + b_ref[...].astype(jnp.float32)               # broadcast (1, D)

    # EUP sigmoid + folded VPU epilogue, all f32; single fused store.
    gate_p2 = jax.nn.sigmoid(y) + 2.0                    # sigmoid(.) + 1, + 1 residual
    feat = feat_ref[...].astype(jnp.float32)             # (TM, D)
    out_ref[...] = (feat * gate_p2).astype(out_ref.dtype)


def _round_up(x, m):
    return (x + m - 1) // m * m


def _vmem_budget_bytes():
    """~75% of this generation's physical VMEM (v7x ~48 MiB, v5e/v6e ~96 MiB)."""
    try:
        cap = int(pltpu.get_tpu_info().vmem_capacity_bytes)
    except Exception:
        cap = 64 * 1024 * 1024   # conservative fallback (v7x-sized)
    return (cap * 3) // 4


def _derive_tm(tm, n, d, stream_bytes_per_row, resident_bytes, budget):
    tm_fit = max((budget - resident_bytes) // max(stream_bytes_per_row, 1), 16)
    if tm_fit >= 256:
        tm_fit = (tm_fit // 256) * 256    # keep the 256-wide MXU (v6e/v7x) fed
    else:
        tm_fit = max((tm_fit // 16) * 16, 16)
    tm = min(tm, tm_fit, _round_up(n, 16))  # 16 = bf16 packed-sublane tile
    return max((tm // 16) * 16, 16)


def simple_highway(feat, interesting, weight_t, bias, *,
                   tm=512, matmul_dtype=jnp.bfloat16, out_dtype=None):
    """SimpleHighway forward.

    feat, interesting: (N, D)
    weight_t:          (D, D) == W_pytorch.T  (so y = x @ weight_t + bias)
    bias:              (D,)
    out_dtype:         output dtype (defaults to feat.dtype); pass bf16 along
                       with bf16 feat/interesting to cut HBM traffic ~1.6x.
    """
    n, d = feat.shape
    if out_dtype is None:
        out_dtype = feat.dtype

    # Only the small resident weight is pre-cast; `interesting` is cast inside
    # the kernel to avoid an extra un-fused full-array HBM pass.
    w = weight_t.astype(matmul_dtype)
    bias2d = bias.reshape(1, d).astype(jnp.float32)

    budget = _vmem_budget_bytes()

    def itemsize(dt):
        return jnp.dtype(dt).itemsize

    # Double-buffered streaming blocks (feat, interesting, out), per row ...
    stream_bytes_per_row = 2 * d * (itemsize(feat.dtype)
                                    + itemsize(interesting.dtype)
                                    + itemsize(out_dtype))
    # ... plus the resident weight (counted double-buffered, conservatively)
    # and the padded bias block.
    resident_bytes = 2 * d * d * itemsize(matmul_dtype) + 2 * 8 * max(d, 128) * 4
    tm = _derive_tm(tm, n, d, stream_bytes_per_row, resident_bytes, budget)

    out = pl.pallas_call(
        functools.partial(_highway_kernel, matmul_dtype=matmul_dtype),
        out_shape=jax.ShapeDtypeStruct((n, d), out_dtype),
        grid=(pl.cdiv(n, tm),),              # ragged last block is masked by Pallas
        in_specs=[
            pl.BlockSpec((tm, d), lambda i: (i, 0)),   # feat: streamed
            pl.BlockSpec((tm, d), lambda i: (i, 0)),   # interesting: streamed
            pl.BlockSpec((d, d), lambda i: (0, 0)),    # weight: VMEM-resident
            pl.BlockSpec((1, d), lambda i: (0, 0)),    # bias:   VMEM-resident
        ],
        out_specs=pl.BlockSpec((tm, d), lambda i: (i, 0)),
        compiler_params=pltpu.CompilerParams(
            dimension_semantics=("parallel",),          # shard row tiles on v7x
            vmem_limit_bytes=int(budget),
        ),
    )(feat, interesting, w, bias2d)
    return out


def reference(feat, interesting, weight_t, bias):
    gate = jax.nn.sigmoid(interesting @ weight_t + bias) + 1.0
    return gate * feat + feat


if __name__ == "__main__":
    key = jax.random.PRNGKey(0)
    batch, dim = 8, 128   # dim = Linear in/out features

    k_feat, k_int, k_w, k_b = jax.random.split(key, 4)
    feat = jax.random.normal(k_feat, (batch, dim), dtype=jnp.float32)
    interesting = jax.random.normal(k_int, (batch, dim), dtype=jnp.float32)

    # Deterministic "PyTorch-style" Linear params: weight (out, in), bias (out,)
    bound = 1.0 / (dim ** 0.5)
    w_pt = jax.random.uniform(k_w, (dim, dim), minval=-bound, maxval=bound,
                              dtype=jnp.float32)
    b_pt = jax.random.uniform(k_b, (dim,), minval=-bound, maxval=bound,
                              dtype=jnp.float32)
    w_t = w_pt.T  # so y = x @ W^T + b  ->  x @ w_t + b

    ref = reference(feat, interesting, w_t, b_pt)

    # 1) Exact-precision check (f32 matmul path) at tight tolerance.
    out_f32 = jax.block_until_ready(
        simple_highway(feat, interesting, w_t, b_pt, matmul_dtype=jnp.float32))
    assert out_f32.shape == (batch, dim)
    assert jnp.allclose(out_f32, ref, atol=1e-5, rtol=1e-5), "f32 path mismatch"

    # 2) Default fast path (bf16 matmul operands cast in-kernel, f32 streams).
    out_bf16 = jax.block_until_ready(
        simple_highway(feat, interesting, w_t, b_pt))
    assert out_bf16.shape == (batch, dim)
    assert jnp.allclose(out_bf16, ref, atol=2e-2, rtol=2e-2), "bf16 matmul path mismatch"

    # 3) Narrow-stream path: bf16 feat/interesting/out (6 B/elem HBM traffic).
    out_narrow = jax.block_until_ready(
        simple_highway(feat.astype(jnp.bfloat16), interesting.astype(jnp.bfloat16),
                       w_t, b_pt, out_dtype=jnp.bfloat16))
    assert out_narrow.shape == (batch, dim) and out_narrow.dtype == jnp.bfloat16
    assert jnp.allclose(out_narrow.astype(jnp.float32), ref, atol=1e-1, rtol=1e-1), \
        "bf16 stream path mismatch"

    # 4) Multi-tile ragged path: N not a multiple of TM, no wrapper padding.
    big_n = 1040
    kf2, ki2 = jax.random.split(jax.random.PRNGKey(1))
    feat2 = jax.random.normal(kf2, (big_n, dim), dtype=jnp.float32)
    int2 = jax.random.normal(ki2, (big_n, dim), dtype=jnp.float32)
    out2 = jax.block_until_ready(
        simple_highway(feat2, int2, w_t, b_pt, tm=512))
    ref2 = reference(feat2, int2, w_t, b_pt)
    assert out2.shape == (big_n, dim)
    assert jnp.allclose(out2, ref2, atol=2e-2, rtol=2e-2), "ragged tiled path mismatch"

    print("KERNEL_OK")
</pallas_src>

<mosaic_0001>
module attributes {stable_mosaic.version = 11 : i64} {
  func.func @_highway_kernel(%arg0: i32, %arg1: memref<16x128xf32, #tpu.memory_space<vmem>>, %arg2: memref<16x128xf32, #tpu.memory_space<vmem>>, %arg3: memref<128x128xf32, #tpu.memory_space<vmem>>, %arg4: memref<1x128xf32, #tpu.memory_space<vmem>>, %arg5: memref<16x128xf32, #tpu.memory_space<vmem>>) attributes {dimension_semantics = [#tpu.dimension_semantics<parallel>], iteration_bounds = array<i64: 1>, scalar_prefetch = 0 : i64, scratch_operands = 0 : i64, tpu.core_type = #tpu.core_type<tc>, window_params = [{transform_indices = @transform_0, window_bounds = array<i64: 16, 128>}, {transform_indices = @transform_1, window_bounds = array<i64: 16, 128>}, {pipeline_mode = #tpu.pipeline_mode<synchronous>, transform_indices = @transform_2, window_bounds = array<i64: 128, 128>}, {pipeline_mode = #tpu.pipeline_mode<synchronous>, transform_indices = @transform_3, window_bounds = array<i64: 1, 128>}, {transform_indices = @transform_4, window_bounds = array<i64: 16, 128>}]} {
    %c0 = arith.constant 0 : index
    %c0_0 = arith.constant 0 : index
    %0 = vector.load %arg2[%c0, %c0_0] : memref<16x128xf32, #tpu.memory_space<vmem>>, vector<16x128xf32>
    %c0_1 = arith.constant 0 : index
    %c0_2 = arith.constant 0 : index
    %1 = vector.load %arg3[%c0_1, %c0_2] : memref<128x128xf32, #tpu.memory_space<vmem>>, vector<128x128xf32>
    %cst = arith.constant dense<0.000000e+00> : vector<16x128xf32>
    %2 = tpu.matmul %0, %1, %cst {dimension_numbers = #tpu.dot_dimension_numbers<[1], [0], [0], [1], [0, 0, 1, 1], [], []>} : vector<16x128xf32>, vector<128x128xf32>, vector<16x128xf32> -> vector<16x128xf32>
    %c0_3 = arith.constant 0 : index
    %c0_4 = arith.constant 0 : index
    %3 = vector.load %arg4[%c0_3, %c0_4] : memref<1x128xf32, #tpu.memory_space<vmem>>, vector<1x128xf32>
    %4 = vector.broadcast %3 : vector<1x128xf32> to vector<16x128xf32>
    %5 = arith.addf %2, %4 : vector<16x128xf32>
    %6 = arith.negf %5 : vector<16x128xf32>
    %7 = math.exp %6 : vector<16x128xf32>
    %cst_5 = arith.constant 1.000000e+00 : f32
    %8 = vector.broadcast %cst_5 : f32 to vector<16x128xf32>
    %9 = arith.addf %8, %7 : vector<16x128xf32>
    %10 = arith.divf %8, %9 : vector<16x128xf32>
    %cst_6 = arith.constant 2.000000e+00 : f32
    %11 = vector.broadcast %cst_6 : f32 to vector<16x128xf32>
    %12 = arith.addf %10, %11 : vector<16x128xf32>
    %c0_7 = arith.constant 0 : index
    %c0_8 = arith.constant 0 : index
    %13 = vector.load %arg1[%c0_7, %c0_8] : memref<16x128xf32, #tpu.memory_space<vmem>>, vector<16x128xf32>
    %14 = arith.mulf %13, %12 : vector<16x128xf32>
    %c0_9 = arith.constant 0 : index
    %c0_10 = arith.constant 0 : index
    %15 = vector.load %arg5[%c0_9, %c0_10] : memref<16x128xf32, #tpu.memory_space<vmem>>, vector<16x128xf32>
    tpu.vector_store %arg5[%c0_9, %c0_10], %14 {strides = array<i32>} : memref<16x128xf32, #tpu.memory_space<vmem>>, vector<16x128xf32>,
    return
  }
  func.func @transform_0(%arg0: i32) -> (i32, i32) {
    %c0_i32 = arith.constant 0 : i32
    %c0_i32_0 = arith.constant 0 : i32
    return %arg0, %c0_i32 : i32, i32
  }
  func.func @transform_1(%arg0: i32) -> (i32, i32) {
    %c0_i32 = arith.constant 0 : i32
    %c0_i32_0 = arith.constant 0 : i32
    return %arg0, %c0_i32 : i32, i32
  }
  func.func @transform_2(%arg0: i32) -> (i32, i32) {
    %c0_i32 = arith.constant 0 : i32
    %c0_i32_0 = arith.constant 0 : i32
    %c0_i32_1 = arith.constant 0 : i32
    return %c0_i32, %c0_i32_0 : i32, i32
  }
  func.func @transform_3(%arg0: i32) -> (i32, i32) {
    %c0_i32 = arith.constant 0 : i32
    %c0_i32_0 = arith.constant 0 : i32
    %c0_i32_1 = arith.constant 0 : i32
    return %c0_i32, %c0_i32_0 : i32, i32
  }
  func.func @transform_4(%arg0: i32) -> (i32, i32) {
    %c0_i32 = arith.constant 0 : i32
    %c0_i32_0 = arith.constant 0 : i32
    return %arg0, %c0_i32 : i32, i32
  }
}

</mosaic_0001>

<bundles_post_ra>
// kernel: tpu_custom_call.1
= control target key start
LH: loop header
LB: loop body
LE: loop exit
PB: predicated region body
PF: predicated region fallthrough
CT: control target
= control target key end

     0   :  { %9 = vsyncpa [#allocation3], 0  ;;  %s494_s0 = inlined_call_operand.hbm [shape: f32[8,128], index: 0, kind: input, shape index: {}]   ;;  %s495_s1 = inlined_call_operand.hbm [shape: f32[8,128], index: 1, kind: input, shape index: {}]   ;;  %s496_s2 = inlined_call_operand.hbm [shape: f32[128,128], index: 2, kind: input, shape index: {}]   ;;  %s497_s3 = inlined_call_operand.vmem [shape: f32[1,128], index: 3, kind: input, shape index: {}]   ;;  %s498_s4 = inlined_call_operand.hbm [shape: f32[8,128], index: 4, kind: output, shape index: {}]  }
   0x1   :  { %10 = vsyncpa [#allocation6], 0 }
   0x2   :  { %11 = vsyncpa [#allocation4], 0 }
   0x3   :  { %16 = vsyncadd [#allocation3], 128  ;;  %s393_s15 = smov [#allocation2]   ;;  %s299_s19 = scalar_lea.hbm %s494_s0, 128 }
   0x4   :  { %s17_s16 = sshll.u32 %s393_s15, 4  ;;  %p300_p0 = scmp.ne.s32.totalorder %s494_s0, %s299_s19  ;;  %s18_s16 = int_to_ptr.vmem [resolvable:$true] %s17_s16 }
   0x5   :  { %p303_p1 = scmp.lt.u32.totalorder %s299_s19, %s494_s0 }
   0x7   :  { %p305_p2 = pnand %p303_p1, %p300_p0 }
   0x9   :  { %308 = shalt.err (!%p305_p2)
}
   0xa   :  { %s309_s24 = scalar_lea.vmem %s18_s16, 128  ;;  %s313_s25 = scalar_lea.vmem %s18_s16, 256 }
   0xb   :  { %p310_p3 = scmp.ne.s32.totalorder %s18_s16, %s309_s24  ;;  %p314_p4 = scmp.lt.s32.totalorder %s18_s16, %s18_s16 }
   0xc   :  { %p315_p5 = scmp.lt.s32.totalorder %s313_s25, %s309_s24 }
   0xe   :  { %p316_p6 = por %p315_p5, %p314_p4 }
  0x10   :  { %p317_p7 = pnand %p316_p6, %p310_p3 }
  0x12   :  { %320 = shalt.err (!%p317_p7)
}
  0x13   :  { %s394_s26 = smov 128   ;;  %s395_s27 = smov 8  }
  0x14   :  { %23 = dma.hbm_to_vmem [thread:$0]  %s494_s0, 128, %s18_s16, [#allocation3], %s394_s26, %s394_s26, %s395_s27  }
  0x15   :  { %28 = vsyncadd [#allocation6], 128  ;;  %s396_s30 = smov [#allocation5]   ;;  %s397_s6 = smov [#allocation7]  }
  0x16   :  { %s29_s5 = sshll.u32 %s396_s30, 4  ;;  %s41_s7 = sshll.u32 %s397_s6, 4  ;;  %s30_s5 = int_to_ptr.vmem [resolvable:$true] %s29_s5  ;;  %s439_s7 = int_to_ptr.vmem [resolvable:$true] %s41_s7 }
  0x17   :  { %s321_s10 = scalar_lea.hbm %s495_s1, 128 }
  0x18   :  { %p322_p8 = scmp.ne.s32.totalorder %s495_s1, %s321_s10  ;;  %p325_p9 = scmp.lt.u32.totalorder %s321_s10, %s495_s1 }
  0x1a   :  { %p327_p10 = pnand %p325_p9, %p322_p8 }
  0x1c   :  { %330 = shalt.err (!%p327_p10)
}
  0x1d   :  { %s331_s0 = scalar_lea.vmem %s30_s5, 128  ;;  %s335_s15 = scalar_lea.vmem %s30_s5, 256 }
  0x1e   :  { %p332_p11 = scmp.ne.s32.totalorder %s30_s5, %s331_s0  ;;  %p336_p12 = scmp.lt.s32.totalorder %s30_s5, %s30_s5 }
  0x1f   :  { %p337_p13 = scmp.lt.s32.totalorder %s335_s15, %s331_s0 }
  0x21   :  { %p338_p0 = por %p337_p13, %p336_p12 }
  0x23   :  { %p339_p1 = pnand %p338_p0, %p332_p11 }
  0x25   :  { %342 = shalt.err (!%p339_p1)
}
  0x26   :  { %35 = dma.hbm_to_vmem [thread:$0]  %s495_s1, 128, %s30_s5, [#allocation6], %s394_s26, %s394_s26, %s395_s27  }
  0x27   :  { %s343_s20 = scalar_lea.hbm %s496_s2, 2048 }
  0x28   :  { %p344_p2 = scmp.ne.s32.totalorder %s496_s2, %s343_s20  ;;  %p347_p3 = scmp.lt.u32.totalorder %s343_s20, %s496_s2 }
  0x2a   :  { %p349_p4 = pnand %p347_p3, %p344_p2 }
  0x2c   :  { %352 = shalt.err (!%p349_p4)
}
  0x2d   :  { %s353_s25 = scalar_lea.vmem %s439_s7, 2048  ;;  %p358_p6 = scmp.lt.s32.totalorder %s439_s7, %s439_s7 }
  0x2e   :  { %p354_p5 = scmp.ne.s32.totalorder %s439_s7, %s353_s25  ;;  %p359_p7 = scmp.lt.s32.totalorder %s353_s25, %s353_s25 }
  0x30   :  { %p360_p8 = por %p359_p7, %p358_p6 }
  0x32   :  { %p361_p9 = pnand %p360_p8, %p354_p5 }
  0x34   :  { %364 = shalt.err (!%p361_p9)
}
  0x35   :  { %47 = dma.hbm_to_vmem [thread:$0]  %s496_s2, 2048, %s439_s7, [#allocation6], %s394_s26, %s394_s26, %s395_s27  }
  0x36   :  { %387 = dma.done.wait [#allocation3], 256  }
  0x37   :  { %388 = vsyncadd [#allocation3], 4294967040 }
  0x38   :  { %389 = dma.done.wait [#allocation6], 2304  }
  0x39   :  { %390 = vsyncadd [#allocation6], 4294964992  ;;  %v61_v0 = vld [vmem:[#allocation7] sm:$0xff]  ;;  %v62_v1 = vld [vmem:[#allocation7 + $0x8] sm:$0xff] }
  0x3a   :  { %v63_v2 = vld [vmem:[#allocation7 + $0x10] sm:$0xff]  ;;  %v253_v3 = vpack.c.bf16 %v62_v1, %v61_v0  ;;  %v64_v4 = vld [vmem:[#allocation7 + $0x18] sm:$0xff]  ;;  %v65_v6 = vld [vmem:[#allocation7 + $0x20] sm:$0xff] }
  0x3b   :  { %v257_v5 = vpack.c.bf16 %v64_v4, %v63_v2  ;;  %v66_v7 = vld [vmem:[#allocation7 + $0x28] sm:$0xff]  ;;  %v59_v9 = vld [vmem:[#allocation5] sm:$0xff]  ;;  %v68_v11 = vld [vmem:[#allocation7 + $0x38] sm:$0xff] }
  0x3c   :  { %254 = vmatprep.subr.bf16.mxu0 %v253_v3  ;;  %v261_v8 = vpack.c.bf16 %v66_v7, %v65_v6  ;;  %v67_v10 = vld [vmem:[#allocation7 + $0x30] sm:$0xff]  ;;  %250 = vmatprep.mubr.f32.mxu0 %v59_v9  ;;  %v69_v13 = vld [vmem:[#allocation7 + $0x40] sm:$0xff]  ;;  %v70_v14 = vld [vmem:[#allocation7 + $0x48] sm:$0xff] }
  0x3d   :  { %256 = vmatpush3.bf16.msra.mxu0 %v253_v3  ;;  %v265_v12 = vpack.c.bf16 %v68_v11, %v67_v10  ;;  %v269_v15 = vpack.c.bf16 %v70_v14, %v69_v13  ;;  %v71_v16 = vld [vmem:[#allocation7 + $0x50] sm:$0xff]  ;;  %v72_v17 = vld [vmem:[#allocation7 + $0x58] sm:$0xff]  ;;  %v73_v19 = vld [vmem:[#allocation7 + $0x60] sm:$0xff] }
  0x3e   :  { %258 = vmatprep.subr.bf16.mxu0 %v257_v5  ;;  %v273_v18 = vpack.c.bf16 %v72_v17, %v71_v16  ;;  %v74_v20 = vld [vmem:[#allocation7 + $0x68] sm:$0xff]  ;;  %v75_v22 = vld [vmem:[#allocation7 + $0x70] sm:$0xff]  ;;  %v76_v23 = vld [vmem:[#allocation7 + $0x78] sm:$0xff] }
  0x3f   :  { %v277_v21 = vpack.c.bf16 %v74_v20, %v73_v19  ;;  %v281_v24 = vpack.c.bf16 %v76_v23, %v75_v22  ;;  %v60_v25 = vld [vmem:[#allocation5 + $0x8] sm:$0xff]  ;;  %v197_v26 = vld [vmem:[%s497_s3] ss:$0 sm:$0xff]  ;;  %v174_v38 = vld [vmem:[#allocation2 + $0x8] sm:$0xff] }
  0x40   :  { %v173_v41 = vld [vmem:[#allocation2] sm:$0xff] }
  0x41   :  { %260 = vmatpush3.bf16.msra.mxu0 %v257_v5 }
  0x42   :  { %262 = vmatprep.subr.bf16.mxu0 %v261_v8 }
  0x45   :  { %264 = vmatpush3.bf16.msra.mxu0 %v261_v8 }
  0x46   :  { %266 = vmatprep.subr.bf16.mxu0 %v265_v12 }
  0x49   :  { %268 = vmatpush3.bf16.msra.mxu0 %v265_v12 }
  0x4a   :  { %270 = vmatprep.subr.bf16.mxu0 %v269_v15 }
  0x4d   :  { %272 = vmatpush3.bf16.msra.mxu0 %v269_v15 }
  0x4e   :  { %274 = vmatprep.subr.bf16.mxu0 %v273_v18 }
  0x51   :  { %276 = vmatpush3.bf16.msra.mxu0 %v273_v18 }
  0x52   :  { %278 = vmatprep.subr.bf16.mxu0 %v277_v21 }
  0x55   :  { %280 = vmatpush3.bf16.msra.mxu0 %v277_v21 }
  0x56   :  { %282 = vmatprep.subr.bf16.mxu0 %v281_v24 }
  0x59   :  { %284 = vmatpush3.bf16.msra.mxu0 %v281_v24 }
  0x5c   :  { %251 = vmatmul.mubr.f32.vlgmr.msra.gmra.mrb[0].mxu0 %v60_v25 }
 0x12f   :  { %v252_v27 = vpop.f32.mrb[0].mxu0 }
 0x130   :  { %v156_v28 = vadd.f32 %v252_v27, %v197_v26  ;;  %v150_v29 = vpop.f32.mrb[1].mxu0 }
 0x131   :  { %v151_v30 = vadd.f32 %v197_v26, %v150_v29 }
 0x132   :  { %v199_v31 = vmul.f32 -1.442695, %v156_v28 }
 0x133   :  { %v198_v32 = vmul.f32 -1.442695, %v151_v30 }
 0x134   :  { %291 = vpow2.f32 %v199_v31 }
 0x135   :  { %293 = vpow2.f32 %v198_v32 }
 0x13e   :  { %v292_v33 = vpop.eup %291 }
 0x13f   :  { %v294_v34 = vpop.eup %293  ;;  %v166_v35 = vadd.f32 1.0, %v292_v33 }
 0x140   :  { %v165_v36 = vadd.f32 1.0, %v294_v34 }
 0x141   :  { %295 = vrcp.f32 %v166_v35 }
 0x142   :  { %297 = vrcp.f32 %v165_v36 }
 0x14b   :  { %v296_v37 = vpop.eup %295 }
 0x14c   :  { %v298_v39 = vpop.eup %297  ;;  %v172_v40 = vadd.f32 2.0, %v296_v37 }
 0x14d   :  { %v171_v42 = vadd.f32 2.0, %v298_v39 }
 0x14e   :  { %v176_v43 = vmul.f32 %v174_v38, %v172_v40 }
 0x14f   :  { %v175_v44 = vmul.f32 %v173_v41, %v171_v42 }
 0x150   :  { %178 = vst [vmem:[#allocation8 + $0x8] sm:$0xff] %v176_v43 }
 0x151   :  { %177 = vst [vmem:[#allocation8] sm:$0xff] %v175_v44 }
 0x152   :  { %183 = vsyncadd [#allocation4], 128  ;;  %s398_s3 = smov [#allocation8]  }
 0x153   :  { %s184_s30 = sshll.u32 %s398_s3, 4  ;;  %s185_s30 = int_to_ptr.vmem [resolvable:$true] %s184_s30 }
 0x154   :  { %s365_s5 = scalar_lea.vmem %s185_s30, 128  ;;  %s369_s6 = scalar_lea.vmem %s185_s30, 256 }
 0x155   :  { %p366_p10 = scmp.ne.s32.totalorder %s185_s30, %s365_s5  ;;  %p370_p11 = scmp.lt.s32.totalorder %s185_s30, %s185_s30 }
 0x156   :  { %p371_p12 = scmp.lt.s32.totalorder %s369_s6, %s365_s5 }
 0x158   :  { %p372_p13 = por %p371_p12, %p370_p11 }
 0x15a   :  { %p373_p0 = pnand %p372_p13, %p366_p10 }
 0x15c   :  { %376 = shalt.err (!%p373_p0)
}
 0x15d   :  { %s377_s9 = scalar_lea.hbm %s498_s4, 128 }
 0x15e   :  { %p378_p1 = scmp.ne.s32.totalorder %s498_s4, %s377_s9  ;;  %p381_p2 = scmp.lt.u32.totalorder %s377_s9, %s498_s4 }
 0x160   :  { %p383_p3 = pnand %p381_p2, %p378_p1 }
 0x162   :  { %386 = shalt.err (!%p383_p3)
}
 0x163   :  { %190 = dma.vmem_to_hbm [thread:$0]  %s185_s30, 128, %s498_s4, [#allocation4], %s394_s26, %s394_s26, %s395_s27  }
 0x164   :  { %391 = dma.done.wait [#allocation4], 256  }
 0x165   :  { %392 = vsyncadd [#allocation4], 4294967040 }
 0x166   :  { %194 = vsyncpa [#allocation3], 1 }
 0x167   :  { %195 = vsyncpa [#allocation6], 1 }
 0x168   :  { %196 = vsyncpa [#allocation4], 1 }

</bundles_post_ra>
